<compile_context>
chip_gen: v5e
topology: v5e:2x2
jax: 0.10.0
libtpu: 0.0.40
codegen_flags: <defaults>
</compile_context>

<pallas_src>
from typing import NamedTuple

import jax
import jax.numpy as jnp
from jax.experimental import pallas as pl
from jax.experimental.pallas import tpu as pltpu

_EPS_OUT = 1e-8           # additive eps in score_func
_EPS_NORM = 1e-4          # per-norm clamp; product clamp == torch's 1e-8 for zero vectors


def _round_up(x, m):
    return ((x + m - 1) // m) * m


def _pick_tile(padded, cap, base):
    """Largest multiple of `base` <= cap that divides `padded` (padded % base == 0)."""
    cap = max(base, min(cap, padded))
    t = (cap // base) * base
    while t > base and padded % t != 0:
        t -= base
    return t


def _vmem_bytes(tB, tN, D, c_item, o_item):
    # double-buffered input tiles + double-buffered output tile + norm vectors
    return 2 * (tB * D * c_item + D * tN * c_item + tB * tN * o_item) + 2 * (tB + tN) * 4


# ----------------------------------------------------------------------------- kernel
def _cl_score_kernel(reps_ref, cen_t_ref, inv_rn_ref, inv_cn_ref, out_ref):
    # reps_ref:   [tB, D]   compute_dtype
    # cen_t_ref:  [D, tN]   compute_dtype  (centers pre-transposed at init)
    # inv_rn_ref: [tB, 1]   f32            (precomputed 1/max(||r||, eps))
    # inv_cn_ref: [1, tN]   f32            (precomputed 1/max(||c||, eps))
    # out_ref:    [tB, tN]  out_dtype
    dots = jnp.dot(reps_ref[...], cen_t_ref[...],
                   preferred_element_type=jnp.float32)          # MXU
    cos = dots * inv_rn_ref[...] * inv_cn_ref[...]              # two broadcast VPU muls
    out_ref[...] = ((1.0 + cos) * 0.5 + _EPS_OUT).astype(out_ref.dtype)


# ------------------------------------------------------------------- parameter-side prep
class PreparedCenters(NamedTuple):
    cen_t: jnp.ndarray       # [D, CM_pad] compute_dtype, lane-dense, zero-padded
    inv_cnorm: jnp.ndarray   # [1, CM_pad] f32 (zeros in padding -> cos = 0 there)
    num_classes: int
    num_centers: int


def prepare_centers(centers, *, compute_dtype=jnp.float32):
    """One-time (init-time) prep of the batch-invariant centers weights."""
    C, M, D = centers.shape
    CM = C * M
    CM_pad = _round_up(CM, 128)

    cen = centers.astype(jnp.float32).reshape(CM, D)             # [CM, D]
    cnorm = jnp.sqrt(jnp.sum(cen * cen, axis=-1))                # [CM]
    inv_cn = 1.0 / jnp.maximum(cnorm, _EPS_NORM)
    inv_cn_p = jnp.pad(inv_cn, (0, CM_pad - CM)).reshape(1, CM_pad)

    cen_t = jnp.transpose(cen)                                   # [D, CM]
    cen_t_p = jnp.pad(cen_t, ((0, 0), (0, CM_pad - CM))).astype(compute_dtype)
    return PreparedCenters(cen_t_p, inv_cn_p, C, M)


# ------------------------------------------------------------------------------ forward
def cl_model_forward(reps, centers, *, compute_dtype=jnp.float32,
                     out_dtype=jnp.float32, tile_b=256, tile_n=256,
                     vmem_limit_bytes=48 * 1024 * 1024):
    """Pallas equivalent of CLModel.forward(reps, centers, score_func).

    reps:    [B, D] float
    centers: [C, M, D] float  OR  a PreparedCenters (prep hoisted to init)
    returns: [B, C, M] out_dtype
    """
    if not isinstance(centers, PreparedCenters):
        centers = prepare_centers(centers, compute_dtype=compute_dtype)
    cen_t_p, inv_cn, C, M = centers
    D, CM_pad = cen_t_p.shape
    CM = C * M

    B, Dr = reps.shape
    assert Dr == D, "feature dims must match"

    # ---- padding only to the (8, 128) hardware granule -------------------------------
    B_pad = _round_up(B, 8)
    c_item = jnp.dtype(compute_dtype).itemsize
    o_item = jnp.dtype(out_dtype).itemsize

    tN = _pick_tile(CM_pad, tile_n, 128)
    tB = _pick_tile(B_pad, tile_b, 8)

    # v7x has 2 TensorCores: if the CM axis collapses to one tile, expose >=2 B blocks.
    if CM_pad // tN == 1 and B_pad // tB < 2 and B_pad >= 16:
        tB = _pick_tile(B_pad, B_pad // 2, 8)

    # VMEM budget (portable down to v7x's 64 MiB physical VMEM).
    budget = int(0.75 * vmem_limit_bytes)
    while not _vmem_bytes(tB, tN, D, c_item, o_item) <= budget and (tB > 8 or tN > 128):
        if tB > 8:
            tB = _pick_tile(B_pad, tB // 2, 8)
        elif tN > 128:
            tN = _pick_tile(CM_pad, tN // 2, 128)
        else:
            break

    # ---- batch-side prep (per call) ---------------------------------------------------
    reps_f = jnp.pad(reps.astype(jnp.float32), ((0, B_pad - B), (0, 0)))   # [B_pad, D]
    rnorm = jnp.sqrt(jnp.sum(reps_f * reps_f, axis=-1, keepdims=True))     # [B_pad, 1]
    inv_rn = 1.0 / jnp.maximum(rnorm, _EPS_NORM)
    reps_p = reps_f.astype(compute_dtype)

    ni = B_pad // tB
    nj = CM_pad // tN

    cost = pl.CostEstimate(
        flops=2 * B_pad * CM_pad * D,
        transcendentals=0,
        bytes_accessed=(c_item * (B_pad * D + D * CM_pad)
                        + o_item * B_pad * CM_pad
                        + 4 * (B_pad + CM_pad)),
    )

    if nj == 1:
        # Single CM tile: drop the j axis; centers + inv_cnorm are DMA'd once and stay
        # VMEM-resident across the whole B loop (constant index_map).
        grid = (ni,)
        in_specs = [
            pl.BlockSpec((tB, D), lambda i: (i, 0)),    # reps tile
            pl.BlockSpec((D, tN), lambda i: (0, 0)),    # centers^T (resident)
            pl.BlockSpec((tB, 1), lambda i: (i, 0)),    # 1/||reps||
            pl.BlockSpec((1, tN), lambda i: (0, 0)),    # 1/||centers|| (resident)
        ]
        out_specs = pl.BlockSpec((tB, tN), lambda i: (i, 0))
        semantics = ("parallel",)
    else:
        # CM axis OUTER, B axis inner: the centers block index is unchanged across the
        # inner B loop, so Pallas revisits the buffer instead of re-streaming it.
        grid = (nj, ni)
        in_specs = [
            pl.BlockSpec((tB, D), lambda j, i: (i, 0)),
            pl.BlockSpec((D, tN), lambda j, i: (0, j)),
            pl.BlockSpec((tB, 1), lambda j, i: (i, 0)),
            pl.BlockSpec((1, tN), lambda j, i: (0, j)),
        ]
        out_specs = pl.BlockSpec((tB, tN), lambda j, i: (i, j))
        semantics = ("parallel", "parallel")

    out = pl.pallas_call(
        _cl_score_kernel,
        out_shape=jax.ShapeDtypeStruct((B_pad, CM_pad), out_dtype),
        grid_spec=pltpu.PrefetchScalarGridSpec(
            num_scalar_prefetch=0,
            grid=grid,
            in_specs=in_specs,
            out_specs=out_specs,
        ),
        compiler_params=pltpu.CompilerParams(
            dimension_semantics=semantics,
            vmem_limit_bytes=vmem_limit_bytes,
        ),
        cost_estimate=cost,
    )(reps_p, cen_t_p, inv_rn, inv_cn)

    return out[:B, :CM].reshape(B, C, M)


# ---------------------------------------------------------------------------- reference
def _reference(reps, centers):
    # Plain-JAX reference mirroring torch's cosine_similarity (clamp on the norm product).
    r = reps[:, None, None, :].astype(jnp.float32)           # [B,1,1,D]
    c = centers[None, :, :, :].astype(jnp.float32)           # [1,C,M,D]
    dot = jnp.sum(r * c, axis=-1)
    rn = jnp.sqrt(jnp.sum(r * r, axis=-1))
    cn = jnp.sqrt(jnp.sum(c * c, axis=-1))
    cos = dot / jnp.maximum(rn * cn, 1e-8)
    return (1.0 + cos) * 0.5 + _EPS_OUT


if __name__ == "__main__":
    key = jax.random.PRNGKey(0)
    k_reps, k_cent = jax.random.split(key)

    # Small shapes consistent with the module: batch=8 utterance reps,
    # hidden dim=32, num_classes=4, num_centers=3.
    # TODO(synk): gen_f_reps (BERT encoder + mask pooling + MLP head) is not
    # translated; synthetic features stand in for its output.
    B, D, C, M = 8, 32, 4, 3

    reps = jax.random.normal(k_reps, (B, D), dtype=jnp.float32)
    centers = jax.random.normal(k_cent, (C, M, D), dtype=jnp.float32)

    ref = _reference(reps, centers)

    # Exact-f32 path (parity with the torch/f32 reference), centers prep hoisted to init.
    prepped = prepare_centers(centers, compute_dtype=jnp.float32)
    scores = cl_model_forward(reps, prepped)
    jax.block_until_ready(scores)
    assert scores.shape == (B, C, M)
    assert jnp.allclose(scores, ref, atol=1e-5, rtol=1e-5), "f32 mismatch vs reference"

    # Fast path: bf16 MXU operands + bf16 output (production default on v6e/v7x).
    scores_fast = cl_model_forward(reps, centers,
                                   compute_dtype=jnp.bfloat16,
                                   out_dtype=jnp.bfloat16)
    jax.block_until_ready(scores_fast)
    assert scores_fast.shape == (B, C, M)
    assert jnp.allclose(scores_fast.astype(jnp.float32), ref, atol=5e-2), \
        "bf16 path diverged beyond expected precision"

    print("KERNEL_OK")
</pallas_src>

<mosaic_0001>
module attributes {stable_mosaic.version = 11 : i64} {
  func.func @_cl_score_kernel(%arg0: i32, %arg1: memref<8x32xf32, #tpu.memory_space<vmem>>, %arg2: memref<32x128xf32, #tpu.memory_space<vmem>>, %arg3: memref<8x1xf32, #tpu.memory_space<vmem>>, %arg4: memref<1x128xf32, #tpu.memory_space<vmem>>, %arg5: memref<8x128xf32, #tpu.memory_space<vmem>>) attributes {dimension_semantics = [#tpu.dimension_semantics<parallel>], iteration_bounds = array<i64: 1>, scalar_prefetch = 0 : i64, scratch_operands = 0 : i64, tpu.core_type = #tpu.core_type<tc>, window_params = [{transform_indices = @transform_0, window_bounds = array<i64: 8, 32>}, {pipeline_mode = #tpu.pipeline_mode<synchronous>, transform_indices = @transform_1, window_bounds = array<i64: 32, 128>}, {transform_indices = @transform_2, window_bounds = array<i64: 8, 1>}, {pipeline_mode = #tpu.pipeline_mode<synchronous>, transform_indices = @transform_3, window_bounds = array<i64: 1, 128>}, {transform_indices = @transform_4, window_bounds = array<i64: 8, 128>}]} {
    %c0 = arith.constant 0 : index
    %c0_0 = arith.constant 0 : index
    %0 = vector.load %arg1[%c0, %c0_0] : memref<8x32xf32, #tpu.memory_space<vmem>>, vector<8x32xf32>
    %c0_1 = arith.constant 0 : index
    %c0_2 = arith.constant 0 : index
    %1 = vector.load %arg2[%c0_1, %c0_2] : memref<32x128xf32, #tpu.memory_space<vmem>>, vector<32x128xf32>
    %cst = arith.constant dense<0.000000e+00> : vector<8x128xf32>
    %2 = tpu.matmul %0, %1, %cst {dimension_numbers = #tpu.dot_dimension_numbers<[1], [0], [0], [1], [0, 0, 1, 1], [], []>} : vector<8x32xf32>, vector<32x128xf32>, vector<8x128xf32> -> vector<8x128xf32>
    %c0_3 = arith.constant 0 : index
    %c0_4 = arith.constant 0 : index
    %3 = vector.load %arg3[%c0_3, %c0_4] : memref<8x1xf32, #tpu.memory_space<vmem>>, vector<8x1xf32>
    %4 = vector.broadcast %3 : vector<8x1xf32> to vector<8x128xf32>
    %5 = arith.mulf %2, %4 : vector<8x128xf32>
    %c0_5 = arith.constant 0 : index
    %c0_6 = arith.constant 0 : index
    %6 = vector.load %arg4[%c0_5, %c0_6] : memref<1x128xf32, #tpu.memory_space<vmem>>, vector<1x128xf32>
    %7 = vector.broadcast %6 : vector<1x128xf32> to vector<8x128xf32>
    %8 = arith.mulf %5, %7 : vector<8x128xf32>
    %cst_7 = arith.constant 1.000000e+00 : f32
    %9 = vector.broadcast %cst_7 : f32 to vector<8x128xf32>
    %10 = arith.addf %9, %8 : vector<8x128xf32>
    %cst_8 = arith.constant 5.000000e-01 : f32
    %11 = vector.broadcast %cst_8 : f32 to vector<8x128xf32>
    %12 = arith.mulf %10, %11 : vector<8x128xf32>
    %cst_9 = arith.constant 9.99999993E-9 : f32
    %13 = vector.broadcast %cst_9 : f32 to vector<8x128xf32>
    %14 = arith.addf %12, %13 : vector<8x128xf32>
    %c0_10 = arith.constant 0 : index
    %c0_11 = arith.constant 0 : index
    %15 = vector.load %arg5[%c0_10, %c0_11] : memref<8x128xf32, #tpu.memory_space<vmem>>, vector<8x128xf32>
    tpu.vector_store %arg5[%c0_10, %c0_11], %14 {strides = array<i32>} : memref<8x128xf32, #tpu.memory_space<vmem>>, vector<8x128xf32>,
    return
  }
  func.func @transform_0(%arg0: i32) -> (i32, i32) {
    %c0_i32 = arith.constant 0 : i32
    %c0_i32_0 = arith.constant 0 : i32
    return %arg0, %c0_i32 : i32, i32
  }
  func.func @transform_1(%arg0: i32) -> (i32, i32) {
    %c0_i32 = arith.constant 0 : i32
    %c0_i32_0 = arith.constant 0 : i32
    %c0_i32_1 = arith.constant 0 : i32
    return %c0_i32, %c0_i32_0 : i32, i32
  }
  func.func @transform_2(%arg0: i32) -> (i32, i32) {
    %c0_i32 = arith.constant 0 : i32
    %c0_i32_0 = arith.constant 0 : i32
    return %arg0, %c0_i32 : i32, i32
  }
  func.func @transform_3(%arg0: i32) -> (i32, i32) {
    %c0_i32 = arith.constant 0 : i32
    %c0_i32_0 = arith.constant 0 : i32
    %c0_i32_1 = arith.constant 0 : i32
    return %c0_i32, %c0_i32_0 : i32, i32
  }
  func.func @transform_4(%arg0: i32) -> (i32, i32) {
    %c0_i32 = arith.constant 0 : i32
    %c0_i32_0 = arith.constant 0 : i32
    return %arg0, %c0_i32 : i32, i32
  }
}

</mosaic_0001>

<bundles_post_ra>
// kernel: tpu_custom_call.1
= control target key start
LH: loop header
LB: loop body
LE: loop exit
PB: predicated region body
PF: predicated region fallthrough
CT: control target
= control target key end

     0   :  { %9 = vsyncpa [#allocation3], 0  ;;  %s201_s0 = inlined_call_operand.vmem [shape: f32[8,32], index: 0, kind: input, shape index: {}]   ;;  %s202_s1 = inlined_call_operand.hbm [shape: f32[32,128], index: 1, kind: input, shape index: {}]   ;;  %s203_s2 = inlined_call_operand.vmem [shape: f32[8,1], index: 2, kind: input, shape index: {}]   ;;  %s204_s3 = inlined_call_operand.vmem [shape: f32[1,128], index: 3, kind: input, shape index: {}]   ;;  %s205_s4 = inlined_call_operand.hbm [shape: f32[8,128], index: 4, kind: output, shape index: {}]  }
   0x1   :  { %10 = vsyncpa [#allocation4], 0  ;;  %s17_s17 = sshll.u32 %s202_s1, 4  ;;  %s156_s18 = smov [#allocation2]   ;;  %s18_s17 = int_to_ptr.hbm [resolvable:$true] %s17_s17 }
   0x2   :  { %s19_s19 = sshll.u32 %s156_s18, 4  ;;  %s157_s20 = smov 128   ;;  %s20_s19 = int_to_ptr.vmem [resolvable:$true] %s19_s19 }
   0x3   :  { %s158_s21 = smov 8  }
   0x4   :  { %25 = dma.hbm_to_vmem [thread:$0]  %s18_s17, 512, %s20_s19, [#allocation3], %s157_s20, %s157_s20, %s158_s21  }
   0x5   :  { %152 = dma.done.wait [#allocation3], 512  }
   0x6   :  { %153 = vsyncadd [#allocation3], 4294966784  ;;  %v159_v0 = vmov 0   ;;  %v38_v1 = vld [vmem:[#allocation2 + $0x18] sm:$0xff]  ;;  %v37_v2 = vld [vmem:[#allocation2 + $0x10] sm:$0xff]  ;;  %vm39_vm0 = vcmask 261120  }
   0x7   :  { %102 = vset.pattern.permute.xlu0 %v159_v0  ;;  %55 = vmatpush.msra.mxu0 %v38_v1  ;;  %v63_v3 = vld [vmem:[%s203_s2] sm:$0xff]  ;;  %v36_v4 = vld [vmem:[#allocation2 + $0x8] sm:$0xff]  ;;  %s160_s2 = smov [#allocation5]   ;;  %s86_s30 = sshll.u32 %s205_s4, 4  ;;  %s87_s30 = int_to_ptr.hbm [resolvable:$true] %s86_s30 }
   0x8   :  { %66 = vperm.xlu0 %102, %v63_v3   ;;  %v35_v5 = vld [vmem:[#allocation2] sm:$0xff]  ;;  %s84_s27 = sshll.u32 %s160_s2, 4  ;;  %s85_s27 = int_to_ptr.vmem [resolvable:$true] %s84_s27 }
   0x9   :  { %56 = vmatpush.msra.mxu0 %v37_v2  ;;  %v34_v6 = vld [vmem:[%s201_s0] sm:$0xff] }
   0xa   :  { %v103_v8 = vld [vmem:[%s204_s3] ss:$0 sm:$0xff] }
   0xb   :  { %57 = vmatpush.msra.mxu0 %v36_v4 }
   0xd   :  { %58 = vmatpush.msra.mxu0 %v35_v5 }
   0xe   :  { %96 = vmatmul.msk.f32.vlgmr.msra.gmra.mxu0 %vm39_vm0, %v34_v6 }
  0x7a   :  { %v67_v7 = vpop.permute.xlu0 %66 }
  0x8b   :  { %v60_v9 = vpop.f32.mrf.mxu0 }
  0x8c   :  { %v69_v10 = vmul.f32 %v67_v7, %v60_v9 }
  0x8e   :  { %v74_v11 = vmul.f32 %v103_v8, %v69_v10 }
  0x90   :  { %v75_v12 = vadd.f32 1.0, %v74_v11 }
  0x92   :  { %v76_v13 = vmul.f32 0.5, %v75_v12 }
  0x94   :  { %v77_v14 = vadd.f32 1e-08, %v76_v13 }
  0x96   :  { %78 = vst [vmem:[#allocation5] sm:$0xff] %v77_v14 }
  0x97   :  { %89 = dma.vmem_to_hbm [thread:$0]  %s85_s27, 128, %s87_s30, [#allocation4]  }
  0x98   :  { %154 = dma.done.wait [#allocation4], 128  }
  0x99   :  { %155 = vsyncadd [#allocation4], 4294967168 }
  0x9a   :  { %94 = vsyncpa [#allocation3], 1 }
  0x9b   :  { %95 = vsyncpa [#allocation4], 1 }

</bundles_post_ra>
